<compile_context>
chip_gen: v5e
topology: v5e:2x2
jax: 0.10.0
libtpu: 0.0.40
codegen_flags: <defaults>
</compile_context>

<pallas_src>
import jax
import jax.numpy as jnp
from jax.experimental import pallas as pl
from jax.experimental.pallas import tpu as pltpu


def _round_up(x, m):
    return ((x + m - 1) // m) * m


# --------------------------------------------------------------------------
# Fused kernel: conv-as-one-matmul + bias + ReLU + GAP + bottleneck + head
# --------------------------------------------------------------------------
def _shot_kernel(x_ref, w9_ref, cb_ref, wb_ref, bb_ref, wc_ref, bc_ref,
                 y_ref, f_ref, pooled_acc):
    """Grid = (batch, row-band tiles); band axis is the reduction axis.

    Per step: one (TM, 128) x (128, F_pad) matmul (all 9 taps fused into the
    contraction), conv bias + ReLU, then an XLU cross-sublane sum into the
    per-image pooled accumulator.  On the last band the BN-folded bottleneck
    and weight-norm-folded classifier run on the pooled features and write
    the lane-dense (1, 1, D_pad/K_pad) output blocks for this image.
    """
    rb = pl.program_id(1)

    @pl.when(rb == 0)
    def _init():
        pooled_acc[...] = jnp.zeros_like(pooled_acc)

    # Single fused-tap matmul: contraction = 9*C (zero-padded to 128 lanes).
    lhs = x_ref[0]                                     # (TM, 128)
    acts = jnp.dot(lhs, w9_ref[...], preferred_element_type=jnp.float32)
    acts = jnp.maximum(acts + cb_ref[...], 0.0)        # conv bias + ReLU

    # Global-average-pool partial sum: cross-sublane reduce (XLU slot, free
    # next to the MXU).  The 1/(H*W) factor is folded into wb on the host.
    pooled_acc[...] += jnp.sum(acts, axis=0, keepdims=True)

    @pl.when(rb == pl.num_programs(1) - 1)
    def _finalize():
        pooled = pooled_acc[...]                       # (1, F_pad) raw sum
        feat = jnp.dot(pooled, wb_ref[...],
                       preferred_element_type=jnp.float32) + bb_ref[...]
        f_ref[...] = feat.reshape(f_ref.shape)
        logits = jnp.dot(feat, wc_ref[...],
                         preferred_element_type=jnp.float32) + bc_ref[...]
        y_ref[...] = logits.reshape(y_ref.shape)


# --------------------------------------------------------------------------
# Wrapper: host-side folding + patch extraction + one pallas_call
# --------------------------------------------------------------------------
@jax.jit
def _shot_forward_impl(images, params):
    images = images.astype(jnp.float32)
    B, C, H, W = images.shape
    F = params["conv_w"].shape[0]
    D = params["wb"].shape[1]
    K = params["v_t"].shape[1]

    F_pad = _round_up(F, 128)                 # lane-dense padded dims
    D_pad = _round_up(D, 128)
    K_pad = _round_up(K, 128)
    KC = 9 * C                                # fused conv contraction dim
    KC_pad = _round_up(KC, 128)

    # Row tile of the patch matrix (pixels per grid step).  Keeps the live
    # conv activations at <= (128, 128) f32 = 64 KB.
    M_img = H * W
    TM = 128
    while M_img % TM != 0 and TM > 8:
        TM //= 2
    if M_img % TM != 0:
        TM = M_img                            # single full-extent band
    n_bands = M_img // TM

    mean = params["mean"].astype(jnp.float32)              # (C,)
    istd = 1.0 / params["std"].astype(jnp.float32)         # (C,)

    # NHWC with a mean-valued halo: the preprocess fold (x - mean) * istd is
    # then exact at the conv's zero-padding border.
    x_nhwc = jnp.transpose(images, (0, 2, 3, 1))            # (B, H, W, C)
    x_halo = jnp.broadcast_to(mean.reshape(1, 1, 1, C), (B, H + 2, W + 2, C))
    x_halo = jax.lax.dynamic_update_slice(x_halo, x_nhwc, (0, 1, 1, 0))

    # Patch rows (host-side, once): row (b, h, w) holds the 3x3xC receptive
    # field, ordered (kh, kw, c); zero-padded to 128 lanes.
    taps = [x_halo[:, kh:kh + H, kw:kw + W, :]
            for kh in range(3) for kw in range(3)]
    x_cols = jnp.concatenate(taps, axis=-1).reshape(B, M_img, KC)
    x_cols = jnp.pad(x_cols, ((0, 0), (0, 0), (0, KC_pad - KC)))

    # Fold (x - mean) * istd into the conv weights / bias; stack taps so the
    # whole conv is one K = 9C contraction.
    w = params["conv_w"].astype(jnp.float32)                # (F, C, 3, 3)
    w_scaled = w * istd.reshape(1, C, 1, 1)
    b_fold = params["conv_b"].astype(jnp.float32) - jnp.sum(
        w_scaled * mean.reshape(1, C, 1, 1), axis=(1, 2, 3))            # (F,)
    w9 = jnp.transpose(w_scaled, (2, 3, 1, 0)).reshape(KC, F)  # (kh,kw,c) x F
    w9 = jnp.pad(w9, ((0, KC_pad - KC), (0, F_pad - F)))
    cb = jnp.pad(b_fold.reshape(1, F), ((0, 0), (0, F_pad - F)))

    # Fold BatchNorm1d (eval) AND the GAP 1/(H*W) into the bottleneck Linear.
    s = params["gamma"] * jax.lax.rsqrt(params["rv"] + 1e-5)            # (1,D)
    wb_f = (params["wb"] * s) * (1.0 / float(H * W))
    wb_f = jnp.pad(wb_f, ((0, F_pad - F), (0, D_pad - D)))
    bb_f = jnp.pad((params["bb"] - params["rm"]) * s + params["beta"],
                   ((0, 0), (0, D_pad - D)))

    # Fold weight_norm into the classifier Linear.
    v = params["v_t"]                                                    # (D,K)
    wc = v * (params["g"] * jax.lax.rsqrt(jnp.sum(v * v, axis=0, keepdims=True)))
    wc = jnp.pad(wc, ((0, D_pad - D), (0, K_pad - K)))
    bc = jnp.pad(params["bc"], ((0, 0), (0, K_pad - K)))

    grid = (B, n_bands)

    # Right-sized VMEM request: double-buffered x tile + resident weights /
    # biases / output blocks / scratch, with ~4x headroom, capped well below
    # the v7x 64 MiB per-TC VMEM (and the v5e 16 MiB scoped default).
    buf_bytes = 4 * (2 * TM * KC_pad                     # x tile, double-buffered
                     + KC_pad * F_pad + F_pad * D_pad + D_pad * K_pad
                     + F_pad + D_pad + K_pad             # biases
                     + 2 * (K_pad + D_pad)               # output blocks
                     + F_pad)                            # pooled scratch
    vmem_limit = int(min(max(4 * buf_bytes, 16 << 20), 48 << 20))

    flops = (2 * B * M_img * KC_pad * F_pad
             + 2 * B * (F_pad * D_pad + D_pad * K_pad))
    bytes_accessed = 4 * (x_cols.size + w9.size + cb.size + wb_f.size
                          + bb_f.size + wc.size + bc.size
                          + B * (K_pad + D_pad))
    cost = pl.CostEstimate(flops=int(flops), transcendentals=0,
                           bytes_accessed=int(bytes_accessed))

    y_p, f_p = pl.pallas_call(
        _shot_kernel,
        out_shape=(jax.ShapeDtypeStruct((B, 1, K_pad), jnp.float32),
                   jax.ShapeDtypeStruct((B, 1, D_pad), jnp.float32)),
        grid=grid,
        in_specs=[
            pl.BlockSpec((1, TM, KC_pad), lambda b, r: (b, r, 0)),
            pl.BlockSpec((KC_pad, F_pad), lambda b, r: (0, 0)),
            pl.BlockSpec((1, F_pad), lambda b, r: (0, 0)),
            pl.BlockSpec((F_pad, D_pad), lambda b, r: (0, 0)),
            pl.BlockSpec((1, D_pad), lambda b, r: (0, 0)),
            pl.BlockSpec((D_pad, K_pad), lambda b, r: (0, 0)),
            pl.BlockSpec((1, K_pad), lambda b, r: (0, 0)),
        ],
        out_specs=(
            pl.BlockSpec((1, 1, K_pad), lambda b, r: (b, 0, 0)),
            pl.BlockSpec((1, 1, D_pad), lambda b, r: (b, 0, 0)),
        ),
        scratch_shapes=[pltpu.VMEM((1, F_pad), jnp.float32)],
        compiler_params=pltpu.CompilerParams(
            dimension_semantics=("parallel", "arbitrary"),
            vmem_limit_bytes=vmem_limit),
        cost_estimate=cost,
    )(x_cols, w9, cb, wb_f, bb_f, wc, bc)

    # Slice away the lane padding.
    return y_p[:, 0, :K], f_p[:, 0, :D]


def shot_forward(images, params, get_features=False):
    y, f = _shot_forward_impl(images, params)
    if get_features:
        return y, f
    return y


def shot_get_features(images, params):
    return _shot_forward_impl(images, params)[1]


# --------------------------------------------------------------------------
# Pure-JAX reference (un-folded math, matches the PyTorch module)
# --------------------------------------------------------------------------
def shot_reference(images, params):
    B, C, H, W = images.shape
    hp = jax.lax.Precision.HIGHEST
    x = (images - params["mean"].reshape(1, C, 1, 1)) / params["std"].reshape(1, C, 1, 1)
    acts = jax.lax.conv_general_dilated(
        x, params["conv_w"], window_strides=(1, 1), padding=((1, 1), (1, 1)),
        dimension_numbers=("NCHW", "OIHW", "NCHW"), precision=hp)
    acts = jnp.maximum(acts + params["conv_b"].reshape(1, -1, 1, 1), 0.0)
    b = jnp.mean(acts, axis=(2, 3))
    f = jnp.dot(b, params["wb"], precision=hp) + params["bb"]
    f = (f - params["rm"]) / jnp.sqrt(params["rv"] + 1e-5) * params["gamma"] + params["beta"]
    v = params["v_t"]
    wn = v * (params["g"] / jnp.sqrt(jnp.sum(v * v, axis=0, keepdims=True)))
    y = jnp.dot(f, wn, precision=hp) + params["bc"]
    return y, f


def init_params(key, C, F, D, K):
    ks = jax.random.split(key, 10)
    return {
        "mean": jnp.array([0.4, 0.45, 0.5, 0.42][:C], jnp.float32),
        "std": jnp.array([0.22, 0.23, 0.24, 0.21][:C], jnp.float32),
        "conv_w": 0.1 * jax.random.normal(ks[0], (F, C, 3, 3), jnp.float32),
        "conv_b": 0.05 * jax.random.normal(ks[1], (F,), jnp.float32),
        "wb": 0.1 * jax.random.normal(ks[2], (F, D), jnp.float32),
        "bb": 0.05 * jax.random.normal(ks[3], (1, D), jnp.float32),
        "gamma": 1.0 + 0.1 * jax.random.normal(ks[4], (1, D), jnp.float32),
        "beta": 0.05 * jax.random.normal(ks[5], (1, D), jnp.float32),
        "rm": 0.05 * jax.random.normal(ks[6], (1, D), jnp.float32),
        "rv": 1.0 + 0.1 * jnp.abs(jax.random.normal(ks[7], (1, D), jnp.float32)),
        "v_t": 0.1 * jax.random.normal(ks[8], (D, K), jnp.float32),
        "g": jnp.ones((1, K), jnp.float32),
        "bc": 0.05 * jax.random.normal(ks[9], (1, K), jnp.float32),
    }


if __name__ == "__main__":
    key = jax.random.PRNGKey(0)
    k_img, k_par = jax.random.split(key)

    B, C, H, W = 2, 4, 16, 16      # small NCHW input
    F, D, K = 32, 64, 10           # backbone feat, bottleneck dim, num_classes

    images = jax.random.uniform(k_img, (B, C, H, W), jnp.float32)
    params = init_params(k_par, C, F, D, K)

    y, f = shot_forward(images, params, get_features=True)
    jax.block_until_ready(y)
    jax.block_until_ready(f)

    y_ref, f_ref = shot_reference(images, params)
    assert y.shape == (B, K) and f.shape == (B, D)
    assert jnp.allclose(y, y_ref, atol=1e-3, rtol=1e-3), \
        float(jnp.max(jnp.abs(y - y_ref)))
    assert jnp.allclose(f, f_ref, atol=1e-3, rtol=1e-3), \
        float(jnp.max(jnp.abs(f - f_ref)))

    print("KERNEL_OK")
</pallas_src>

<mosaic_0001>
module attributes {stable_mosaic.version = 11 : i64} {
  func.func @_shot_kernel(%arg0: i32, %arg1: i32, %arg2: memref<1x128x128xf32, #tpu.memory_space<vmem>>, %arg3: memref<128x128xf32, #tpu.memory_space<vmem>>, %arg4: memref<1x128xf32, #tpu.memory_space<vmem>>, %arg5: memref<128x128xf32, #tpu.memory_space<vmem>>, %arg6: memref<1x128xf32, #tpu.memory_space<vmem>>, %arg7: memref<128x128xf32, #tpu.memory_space<vmem>>, %arg8: memref<1x128xf32, #tpu.memory_space<vmem>>, %arg9: memref<1x1x128xf32, #tpu.memory_space<vmem>>, %arg10: memref<1x1x128xf32, #tpu.memory_space<vmem>>, %arg11: memref<1x128xf32, #tpu.memory_space<vmem>>) attributes {dimension_semantics = [#tpu.dimension_semantics<parallel>, #tpu.dimension_semantics<arbitrary>], iteration_bounds = array<i64: 2, 2>, scalar_prefetch = 0 : i64, scratch_operands = 1 : i64, tpu.core_type = #tpu.core_type<tc>, window_params = [{transform_indices = @transform_0, window_bounds = array<i64: 1, 128, 128>}, {pipeline_mode = #tpu.pipeline_mode<synchronous>, transform_indices = @transform_1, window_bounds = array<i64: 128, 128>}, {pipeline_mode = #tpu.pipeline_mode<synchronous>, transform_indices = @transform_2, window_bounds = array<i64: 1, 128>}, {pipeline_mode = #tpu.pipeline_mode<synchronous>, transform_indices = @transform_3, window_bounds = array<i64: 128, 128>}, {pipeline_mode = #tpu.pipeline_mode<synchronous>, transform_indices = @transform_4, window_bounds = array<i64: 1, 128>}, {pipeline_mode = #tpu.pipeline_mode<synchronous>, transform_indices = @transform_5, window_bounds = array<i64: 128, 128>}, {pipeline_mode = #tpu.pipeline_mode<synchronous>, transform_indices = @transform_6, window_bounds = array<i64: 1, 128>}, {transform_indices = @transform_7, window_bounds = array<i64: 1, 1, 128>}, {transform_indices = @transform_8, window_bounds = array<i64: 1, 1, 128>}]} {
    %c0_i32 = arith.constant 0 : i32
    %0 = arith.cmpi eq, %arg1, %c0_i32 : i32
    %1 = arith.extui %0 : i1 to i32
    %c0_i32_0 = arith.constant 0 : i32
    %2 = arith.cmpi ne, %1, %c0_i32_0 : i32
    scf.if %2 {
      %cst_14 = arith.constant 0.000000e+00 : f32
      %20 = vector.broadcast %cst_14 : f32 to vector<1x128xf32>
      %c0_15 = arith.constant 0 : index
      %c0_16 = arith.constant 0 : index
      %21 = vector.load %arg11[%c0_15, %c0_16] : memref<1x128xf32, #tpu.memory_space<vmem>>, vector<1x128xf32>
      tpu.vector_store %arg11[%c0_15, %c0_16], %20 {strides = array<i32>} : memref<1x128xf32, #tpu.memory_space<vmem>>, vector<1x128xf32>,
    } else {
    }
    %c0 = arith.constant 0 : index
    %c0_1 = arith.constant 0 : index
    %c0_2 = arith.constant 0 : index
    %3 = vector.load %arg2[%c0, %c0_1, %c0_2] : memref<1x128x128xf32, #tpu.memory_space<vmem>>, vector<1x128x128xf32>
    %4 = vector.shape_cast %3 : vector<1x128x128xf32> to vector<128x128xf32>
    %c0_3 = arith.constant 0 : index
    %c0_4 = arith.constant 0 : index
    %5 = vector.load %arg3[%c0_3, %c0_4] : memref<128x128xf32, #tpu.memory_space<vmem>>, vector<128x128xf32>
    %cst = arith.constant dense<0.000000e+00> : vector<128x128xf32>
    %6 = tpu.matmul %4, %5, %cst {dimension_numbers = #tpu.dot_dimension_numbers<[1], [0], [0], [1], [0, 0, 1, 1], [], []>} : vector<128x128xf32>, vector<128x128xf32>, vector<128x128xf32> -> vector<128x128xf32>
    %c0_5 = arith.constant 0 : index
    %c0_6 = arith.constant 0 : index
    %7 = vector.load %arg4[%c0_5, %c0_6] : memref<1x128xf32, #tpu.memory_space<vmem>>, vector<1x128xf32>
    %8 = vector.broadcast %7 : vector<1x128xf32> to vector<128x128xf32>
    %9 = arith.addf %6, %8 : vector<128x128xf32>
    %cst_7 = arith.constant 0.000000e+00 : f32
    %10 = vector.broadcast %cst_7 : f32 to vector<128x128xf32>
    %11 = arith.maximumf %9, %10 : vector<128x128xf32>
    %c0_8 = arith.constant 0 : index
    %c0_9 = arith.constant 0 : index
    %12 = vector.load %arg11[%c0_8, %c0_9] : memref<1x128xf32, #tpu.memory_space<vmem>>, vector<1x128xf32>
    %cst_10 = arith.constant dense<0.000000e+00> : vector<128xf32>
    %13 = vector.multi_reduction <add>, %11, %cst_10 [0] : vector<128x128xf32> to vector<128xf32>
    %14 = vector.shape_cast %13 : vector<128xf32> to vector<1x128xf32>
    %15 = arith.addf %12, %14 : vector<1x128xf32>
    %c0_11 = arith.constant 0 : index
    %c0_12 = arith.constant 0 : index
    %16 = vector.load %arg11[%c0_11, %c0_12] : memref<1x128xf32, #tpu.memory_space<vmem>>, vector<1x128xf32>
    tpu.vector_store %arg11[%c0_11, %c0_12], %15 {strides = array<i32>} : memref<1x128xf32, #tpu.memory_space<vmem>>, vector<1x128xf32>,
    %c1_i32 = arith.constant 1 : i32
    %17 = arith.cmpi eq, %arg1, %c1_i32 : i32
    %18 = arith.extui %17 : i1 to i32
    %c0_i32_13 = arith.constant 0 : i32
    %19 = arith.cmpi ne, %18, %c0_i32_13 : i32
    scf.if %19 {
      %c0_14 = arith.constant 0 : index
      %c0_15 = arith.constant 0 : index
      %20 = vector.load %arg11[%c0_14, %c0_15] : memref<1x128xf32, #tpu.memory_space<vmem>>, vector<1x128xf32>
      %c0_16 = arith.constant 0 : index
      %c0_17 = arith.constant 0 : index
      %21 = vector.load %arg5[%c0_16, %c0_17] : memref<128x128xf32, #tpu.memory_space<vmem>>, vector<128x128xf32>
      %cst_18 = arith.constant dense<0.000000e+00> : vector<1x128xf32>
      %22 = tpu.matmul %20, %21, %cst_18 {dimension_numbers = #tpu.dot_dimension_numbers<[1], [0], [0], [1], [0, 0, 1, 1], [], []>} : vector<1x128xf32>, vector<128x128xf32>, vector<1x128xf32> -> vector<1x128xf32>
      %c0_19 = arith.constant 0 : index
      %c0_20 = arith.constant 0 : index
      %23 = vector.load %arg6[%c0_19, %c0_20] : memref<1x128xf32, #tpu.memory_space<vmem>>, vector<1x128xf32>
      %24 = arith.addf %22, %23 : vector<1x128xf32>
      %25 = vector.shape_cast %24 : vector<1x128xf32> to vector<1x1x128xf32>
      %c0_21 = arith.constant 0 : index
      %c0_22 = arith.constant 0 : index
      %c0_23 = arith.constant 0 : index
      %26 = vector.load %arg10[%c0_21, %c0_22, %c0_23] : memref<1x1x128xf32, #tpu.memory_space<vmem>>, vector<1x1x128xf32>
      tpu.vector_store %arg10[%c0_21, %c0_22, %c0_23], %25 {strides = array<i32>} : memref<1x1x128xf32, #tpu.memory_space<vmem>>, vector<1x1x128xf32>,
      %c0_24 = arith.constant 0 : index
      %c0_25 = arith.constant 0 : index
      %27 = vector.load %arg7[%c0_24, %c0_25] : memref<128x128xf32, #tpu.memory_space<vmem>>, vector<128x128xf32>
      %cst_26 = arith.constant dense<0.000000e+00> : vector<1x128xf32>
      %28 = tpu.matmul %24, %27, %cst_26 {dimension_numbers = #tpu.dot_dimension_numbers<[1], [0], [0], [1], [0, 0, 1, 1], [], []>} : vector<1x128xf32>, vector<128x128xf32>, vector<1x128xf32> -> vector<1x128xf32>
      %c0_27 = arith.constant 0 : index
      %c0_28 = arith.constant 0 : index
      %29 = vector.load %arg8[%c0_27, %c0_28] : memref<1x128xf32, #tpu.memory_space<vmem>>, vector<1x128xf32>
      %30 = arith.addf %28, %29 : vector<1x128xf32>
      %31 = vector.shape_cast %30 : vector<1x128xf32> to vector<1x1x128xf32>
      %c0_29 = arith.constant 0 : index
      %c0_30 = arith.constant 0 : index
      %c0_31 = arith.constant 0 : index
      %32 = vector.load %arg9[%c0_29, %c0_30, %c0_31] : memref<1x1x128xf32, #tpu.memory_space<vmem>>, vector<1x1x128xf32>
      tpu.vector_store %arg9[%c0_29, %c0_30, %c0_31], %31 {strides = array<i32>} : memref<1x1x128xf32, #tpu.memory_space<vmem>>, vector<1x1x128xf32>,
    } else {
    }
    return
  }
  func.func @transform_0(%arg0: i32, %arg1: i32) -> (i32, i32, i32) {
    %c0_i32 = arith.constant 0 : i32
    %c0_i32_0 = arith.constant 0 : i32
    return %arg0, %arg1, %c0_i32 : i32, i32, i32
  }
  func.func @transform_1(%arg0: i32, %arg1: i32) -> (i32, i32) {
    %c0_i32 = arith.constant 0 : i32
    %c0_i32_0 = arith.constant 0 : i32
    %c0_i32_1 = arith.constant 0 : i32
    return %c0_i32, %c0_i32_0 : i32, i32
  }
  func.func @transform_2(%arg0: i32, %arg1: i32) -> (i32, i32) {
    %c0_i32 = arith.constant 0 : i32
    %c0_i32_0 = arith.constant 0 : i32
    %c0_i32_1 = arith.constant 0 : i32
    return %c0_i32, %c0_i32_0 : i32, i32
  }
  func.func @transform_3(%arg0: i32, %arg1: i32) -> (i32, i32) {
    %c0_i32 = arith.constant 0 : i32
    %c0_i32_0 = arith.constant 0 : i32
    %c0_i32_1 = arith.constant 0 : i32
    return %c0_i32, %c0_i32_0 : i32, i32
  }
  func.func @transform_4(%arg0: i32, %arg1: i32) -> (i32, i32) {
    %c0_i32 = arith.constant 0 : i32
    %c0_i32_0 = arith.constant 0 : i32
    %c0_i32_1 = arith.constant 0 : i32
    return %c0_i32, %c0_i32_0 : i32, i32
  }
  func.func @transform_5(%arg0: i32, %arg1: i32) -> (i32, i32) {
    %c0_i32 = arith.constant 0 : i32
    %c0_i32_0 = arith.constant 0 : i32
    %c0_i32_1 = arith.constant 0 : i32
    return %c0_i32, %c0_i32_0 : i32, i32
  }
  func.func @transform_6(%arg0: i32, %arg1: i32) -> (i32, i32) {
    %c0_i32 = arith.constant 0 : i32
    %c0_i32_0 = arith.constant 0 : i32
    %c0_i32_1 = arith.constant 0 : i32
    return %c0_i32, %c0_i32_0 : i32, i32
  }
  func.func @transform_7(%arg0: i32, %arg1: i32) -> (i32, i32, i32) {
    %c0_i32 = arith.constant 0 : i32
    %c0_i32_0 = arith.constant 0 : i32
    %c0_i32_1 = arith.constant 0 : i32
    return %arg0, %c0_i32, %c0_i32_0 : i32, i32, i32
  }
  func.func @transform_8(%arg0: i32, %arg1: i32) -> (i32, i32, i32) {
    %c0_i32 = arith.constant 0 : i32
    %c0_i32_0 = arith.constant 0 : i32
    %c0_i32_1 = arith.constant 0 : i32
    return %arg0, %c0_i32, %c0_i32_0 : i32, i32, i32
  }
}

</mosaic_0001>

<bundles_post_ra>
// kernel: _shot_forward_impl.1
= control target key start
LH: loop header
LB: loop body
LE: loop exit
PB: predicated region body
PF: predicated region fallthrough
CT: control target
= control target key end

     0   :  { %s1329_s0 = inlined_call_operand.vmem [shape: f32[2,256,128], index: 0, kind: input, shape index: {}]   ;;  %s1330_s1 = inlined_call_operand.vmem [shape: f32[128,128], index: 1, kind: input, shape index: {}]   ;;  %s1331_s2 = inlined_call_operand.vmem [shape: f32[1,128], index: 2, kind: input, shape index: {}]   ;;  %s1332_s3 = inlined_call_operand.vmem [shape: f32[128,128], index: 3, kind: input, shape index: {}]   ;;  %s1333_s4 = inlined_call_operand.vmem [shape: f32[1,128], index: 4, kind: input, shape index: {}]   ;;  %s1334_s5 = inlined_call_operand.vmem [shape: f32[128,128], index: 5, kind: input, shape index: {}]   ;;  %s1335_s6 = inlined_call_operand.vmem [shape: f32[1,128], index: 6, kind: input, shape index: {}]   ;;  %s1336_s7 = inlined_call_operand.hbm [shape: f32[2,1,128], index: 7, kind: output, shape index: {0}]   ;;  %s1337_s8 = inlined_call_operand.hbm [shape: f32[2,1,128], index: 8, kind: output, shape index: {1}]  }
   0x1   :  { %1341 = sst [smem:[#allocation13_spill]] %s1329_s0 }
   0x2   :  { %14 = vsyncpa [#allocation4], 0 }
   0x3   :  { %16 = vsyncpa [#allocation4 + $0x1], 0 }
   0x4   :  { %17 = vsyncpa [#allocation6], 0 }
   0x5   :  { %19 = vsyncpa [#allocation6 + $0x1], 0  ;;  %s1010_s27 = smov 0   ;;  %s1012_s28 = smov 0  }
   0x6   :  { %s1014_s29 = smov 0   ;;  %s1016_s30 = smov 0  }
   0x7   :  { %s1018_s9 = smov 0   ;;  %s1020_s10 = smov 0  }
   0x8   :  { %s1022_s11 = smov 0   ;;  %s1024_s12 = smov 0  }
   0x9 LB: > { %1342 = sst [smem:[#allocation9_spill]] %s954_s10  ;;  %s698_s13 = sadd.s32 4294967295, %s962_s12   ;;  %s962_s12 = sphi %s1024_s12, %s25_s12   ;;  %s958_s11 = sphi %s1022_s11, %s1352_s11   ;;  %s954_s10 = sphi %s1020_s10, %s1351_s10   ;;  %s950_s9 = sphi %s1018_s9, %s1350_s9   ;;  %s946_s30 = sphi %s1016_s30, %s1349_s30   ;;  %s942_s29 = sphi %s1014_s29, %s1355_s29   ;;  %s938_s28 = sphi %s1012_s28, %s1354_s28   ;;  %s934_s27 = sphi %s1010_s27, %s1353_s27  }
   0xa   : > { %1343 = sst [smem:[#allocation10_spill]] %s958_s11  ;;  %s699_s14 = sadd.s32 4294967294, %s962_s12  }
   0xb   : > { %s34_s15 = sadd.s32 1, %s954_s10  ;;  %s37_s16 = sadd.s32 1, %s958_s11 }
   0xc   : > { %p35_p0 = scmp.ge.s32.totalorder %s34_s15, 2  ;;  %p208_p1 = scmp.ne.s32.totalorder %s942_s29, %s938_s28 }
   0xd   : > { %p209_p2 = scmp.eq.s32.totalorder %s698_s13, 3  ;;  %p214_p4 = scmp.ne.s32.totalorder %s938_s28, %s934_s27 }
   0xe   : > { %s1357_s15 = smov (%p35_p0, %s34_s15), 0  ;;  %s1359_s16 = smov (!%p35_p0, %s37_s16), %s958_s11 }
   0xf   : > { %1344 = sst [smem:[#allocation11_spill]] %s1357_s15  ;;  %p1059_p3 = por %p209_p2, %p208_p1 }
  0x10   : > { %p39_p5 = scmp.ge.s32.totalorder %s1359_s16, 2  ;;  %p215_p6 = scmp.eq.s32.totalorder %s699_s14, 3 }
  0x11   : > { %p702_p7 = scmp.ge.s32.totalorder %s962_s12, 1  ;;  %p290_p8 = scmp.lt.s32.totalorder %s962_s12, 5 }
  0x12   : > { %s1361_s16 = smov (%p39_p5, %s1359_s16), 0  ;;  %p1069_p9 = por %p215_p6, %p214_p4 }
  0x13   : > { %1346 = sst [smem:[#allocation12_spill]] %s1361_s16  ;;  %p291_p10 = pnand %p702_p7, %p290_p8 }
  0x14   : > { %s195_s19 = ssub.s32 %s958_s11, %s1361_s16  ;;  %s198_s20 = sadd.s32 1, %s942_s29 }
  0x15   : > { %p196_p11 = scmp.eq.s32.totalorder %s195_s19, 0  ;;  %294 = sbr.rel (%p291_p10) target bundleno = 581 (0x245), region = 48 }
  0x16   : > { %s1080_s22 = sand.u32 (!%p291_p10), 1, %s938_s28   ;;  %s703_s23 = sshll.u32 (!%p291_p10), %s946_s30, 4 }
  0x17   : > { %s1077_s21 = scalar_select %p196_p11, %s942_s29, %s198_s20  }
  0x18   : > { %p332_p12 = scmp.lt.s32.totalorder (!%p291_p10), %s950_s9, 1  ;;  %p334_p13 = scmp.lt.s32.totalorder (!%p291_p10), %s703_s23, 31 }
  0x19   : > { %s1348_s0 = sld [smem:[#allocation13_spill]] (!%p291_p10)  ;;  %s324_s16 = scalar_lea.vmem (!%p291_p10), [#allocation3], %s1080_s22 }
  0x1a   : > { %s333_s24 = scalar_select %p332_p12, %s950_s9, 1 }
  0x1b   : > { %s1363_s23 = smov (!%p334_p13, %s703_s23), 31  ;;  %s330_s15 = scalar_lea.vmem [#allocation5], %s1080_s22 }
  0x1c   : > { %s704_s25 = sshll.u32 %s333_s24, 5  ;;  %p706_p0 = scmp.ne.s32.totalorder %s946_s30, 0 }
  0x1d   : > { %s337_s26 = sadd.s32 %s704_s25, %s1363_s23 }
  0x1e   : > { %s705_s13 = sshll.u32 %s337_s26, 3  ;;  %344 = sbr.rel (%p706_p0) target bundleno = 37 (0x25), region = 52 }
  0x1f   : > { %s1088_s20 = scalar_lea.vmem %s1348_s0, %s705_s13 }
  0x23   : > { %v964_v0 = vmov 0.0  }
  0x24   : > { %345 = vst [vmem:[#allocation2] sm:$0x1] %v964_v0 }
  0x25 PF: > { %v377_v1 = vld [vmem:[%s1330_s1 + $0x78] sm:$0xff]  ;;  %v376_v2 = vld [vmem:[%s1330_s1 + $0x70] sm:$0xff]  ;;  %v375_v3 = vld [vmem:[%s1330_s1 + $0x68] sm:$0xff]  ;;  %p707_p1 = scmp.ne.s32.totalorder %s946_s30, 1 }
  0x26   : > { %382 = vmatpush.msra.mxu0 %v377_v1  ;;  %710 = vmatpush.msra.mxu1 %v377_v1  ;;  %v374_v4 = vld [vmem:[%s1330_s1 + $0x60] sm:$0xff]  ;;  %v373_v5 = vld [vmem:[%s1330_s1 + $0x58] sm:$0xff]  ;;  %v372_v6 = vld [vmem:[%s1330_s1 + $0x50] sm:$0xff] }
  0x27   : > { %711 = vmatpush.msra.mxu2 %v377_v1  ;;  %712 = vmatpush.msra.mxu3 %v377_v1  ;;  %v371_v7 = vld [vmem:[%s1330_s1 + $0x48] sm:$0xff]  ;;  %v370_v8 = vld [vmem:[%s1330_s1 + $0x40] sm:$0xff]  ;;  %v369_v9 = vld [vmem:[%s1330_s1 + $0x38] sm:$0xff] }
  0x28   : > { %383 = vmatpush.msra.mxu0 %v376_v2  ;;  %713 = vmatpush.msra.mxu1 %v376_v2  ;;  %v368_v10 = vld [vmem:[%s1330_s1 + $0x30] sm:$0xff]  ;;  %v367_v11 = vld [vmem:[%s1330_s1 + $0x28] sm:$0xff]  ;;  %v366_v12 = vld [vmem:[%s1330_s1 + $0x20] sm:$0xff] }
  0x29   : > { %714 = vmatpush.msra.mxu2 %v376_v2  ;;  %715 = vmatpush.msra.mxu3 %v376_v2  ;;  %v365_v13 = vld [vmem:[%s1330_s1 + $0x18] sm:$0xff]  ;;  %v364_v14 = vld [vmem:[%s1330_s1 + $0x10] sm:$0xff]  ;;  %v363_v15 = vld [vmem:[%s1330_s1 + $0x8] sm:$0xff] }
  0x2a   : > { %384 = vmatpush.msra.mxu0 %v375_v3  ;;  %716 = vmatpush.msra.mxu1 %v375_v3  ;;  %v362_v16 = vld [vmem:[%s1330_s1] sm:$0xff]  ;;  %v347_v21 = vld [vmem:[%s1088_s20 + $0x8] sm:$0xff]  ;;  %v348_v25 = vld [vmem:[%s1088_s20 + $0x10] sm:$0xff] }
  0x2b   : > { %717 = vmatpush.msra.mxu2 %v375_v3  ;;  %718 = vmatpush.msra.mxu3 %v375_v3  ;;  %v346_v17 = vld [vmem:[%s1088_s20] sm:$0xff]  ;;  %v351_v22 = vld [vmem:[%s1088_s20 + $0x28] sm:$0xff]  ;;  %v352_v26 = vld [vmem:[%s1088_s20 + $0x30] sm:$0xff] }
  0x2c   : > { %385 = vmatpush.msra.mxu0 %v374_v4  ;;  %719 = vmatpush.msra.mxu1 %v374_v4  ;;  %v350_v18 = vld [vmem:[%s1088_s20 + $0x20] sm:$0xff]  ;;  %v355_v23 = vld [vmem:[%s1088_s20 + $0x48] sm:$0xff]  ;;  %v356_v27 = vld [vmem:[%s1088_s20 + $0x50] sm:$0xff] }
  0x2d   : > { %720 = vmatpush.msra.mxu2 %v374_v4  ;;  %721 = vmatpush.msra.mxu3 %v374_v4  ;;  %v354_v19 = vld [vmem:[%s1088_s20 + $0x40] sm:$0xff]  ;;  %v359_v24 = vld [vmem:[%s1088_s20 + $0x68] sm:$0xff]  ;;  %v360_v28 = vld [vmem:[%s1088_s20 + $0x70] sm:$0xff] }
  0x2e   : > { %386 = vmatpush.msra.mxu0 %v373_v5  ;;  %722 = vmatpush.msra.mxu1 %v373_v5  ;;  %v358_v20 = vld [vmem:[%s1088_s20 + $0x60] sm:$0xff]  ;;  %v349_v29 = vld [vmem:[%s1088_s20 + $0x18] sm:$0xff] }
  0x2f   : > { %723 = vmatpush.msra.mxu2 %v373_v5  ;;  %724 = vmatpush.msra.mxu3 %v373_v5  ;;  %v353_v30 = vld [vmem:[%s1088_s20 + $0x38] sm:$0xff]  ;;  %v835_v39 = vld [vmem:[%s1331_s2] ss:$0 sm:$0xff] }
  0x30   : > { %387 = vmatpush.msra.mxu0 %v372_v6  ;;  %725 = vmatpush.msra.mxu1 %v372_v6  ;;  %v357_v31 = vld [vmem:[%s1088_s20 + $0x58] sm:$0xff] }
  0x31   : > { %726 = vmatpush.msra.mxu2 %v372_v6  ;;  %727 = vmatpush.msra.mxu3 %v372_v6  ;;  %v361_v32 = vld [vmem:[%s1088_s20 + $0x78] sm:$0xff] }
  0x32   : > { %388 = vmatpush.msra.mxu0 %v371_v7  ;;  %728 = vmatpush.msra.mxu1 %v371_v7 }
  0x33   : > { %729 = vmatpush.msra.mxu2 %v371_v7  ;;  %730 = vmatpush.msra.mxu3 %v371_v7 }
  0x34   : > { %389 = vmatpush.msra.mxu0 %v370_v8  ;;  %731 = vmatpush.msra.mxu1 %v370_v8 }
  0x35   : > { %732 = vmatpush.msra.mxu2 %v370_v8  ;;  %733 = vmatpush.msra.mxu3 %v370_v8 }
  0x36   : > { %390 = vmatpush.msra.mxu0 %v369_v9  ;;  %734 = vmatpush.msra.mxu1 %v369_v9 }
  0x37   : > { %735 = vmatpush.msra.mxu2 %v369_v9  ;;  %736 = vmatpush.msra.mxu3 %v369_v9 }
  0x38   : > { %391 = vmatpush.msra.mxu0 %v368_v10  ;;  %737 = vmatpush.msra.mxu1 %v368_v10 }
  0x39   : > { %738 = vmatpush.msra.mxu2 %v368_v10  ;;  %739 = vmatpush.msra.mxu3 %v368_v10 }
  0x3a   : > { %392 = vmatpush.msra.mxu0 %v367_v11  ;;  %740 = vmatpush.msra.mxu1 %v367_v11 }
  0x3b   : > { %741 = vmatpush.msra.mxu2 %v367_v11  ;;  %742 = vmatpush.msra.mxu3 %v367_v11 }
  0x3c   : > { %393 = vmatpush.msra.mxu0 %v366_v12  ;;  %743 = vmatpush.msra.mxu1 %v366_v12 }
  0x3d   : > { %744 = vmatpush.msra.mxu2 %v366_v12  ;;  %745 = vmatpush.msra.mxu3 %v366_v12 }
  0x3e   : > { %394 = vmatpush.msra.mxu0 %v365_v13  ;;  %746 = vmatpush.msra.mxu1 %v365_v13 }
  0x3f   : > { %747 = vmatpush.msra.mxu2 %v365_v13  ;;  %748 = vmatpush.msra.mxu3 %v365_v13 }
  0x40   : > { %395 = vmatpush.msra.mxu0 %v364_v14  ;;  %749 = vmatpush.msra.mxu1 %v364_v14 }
  0x41   : > { %750 = vmatpush.msra.mxu2 %v364_v14  ;;  %751 = vmatpush.msra.mxu3 %v364_v14 }
  0x42   : > { %396 = vmatpush.msra.mxu0 %v363_v15  ;;  %752 = vmatpush.msra.mxu1 %v363_v15 }
  0x43   : > { %753 = vmatpush.msra.mxu2 %v363_v15  ;;  %754 = vmatpush.msra.mxu3 %v363_v15 }
  0x44   : > { %397 = vmatpush.msra.mxu0 %v362_v16  ;;  %755 = vmatpush.msra.mxu1 %v362_v16 }
  0x45   : > { %398 = vmatmul.f32.vlgmr.msra.gmra.mxu0 %v346_v17  ;;  %410 = vmatmul.f32.vlgmr.msra.gmra.mxu1 %v350_v18 }
  0x46   : > { %756 = vmatpush.msra.mxu2 %v362_v16  ;;  %757 = vmatpush.msra.mxu3 %v362_v16 }
  0x47   : > { %422 = vmatmul.f32.vlgmr.msra.gmra.mxu2 %v354_v19  ;;  %434 = vmatmul.f32.vlgmr.msra.gmra.mxu3 %v358_v20 }
  0x4d   : > { %401 = vmatmul.f32.gmra.mxu0 %v347_v21  ;;  %413 = vmatmul.f32.gmra.mxu1 %v351_v22 }
  0x4f   : > { %425 = vmatmul.f32.gmra.mxu2 %v355_v23  ;;  %437 = vmatmul.f32.gmra.mxu3 %v359_v24 }
  0x55   : > { %404 = vmatmul.f32.gmra.mxu0 %v348_v25  ;;  %416 = vmatmul.f32.gmra.mxu1 %v352_v26 }
  0x57   : > { %428 = vmatmul.f32.gmra.mxu2 %v356_v27  ;;  %440 = vmatmul.f32.gmra.mxu3 %v360_v28 }
  0x5d   : > { %407 = vmatmul.f32.gmra.mxu0 %v349_v29  ;;  %419 = vmatmul.f32.gmra.mxu1 %v353_v30 }
  0x5f   : > { %431 = vmatmul.f32.gmra.mxu2 %v357_v31  ;;  %443 = vmatmul.f32.gmra.mxu3 %v361_v32 }
  0xc2   : > { %v399_v33 = vpop.f32.mrf.mxu0  ;;  %v411_v34 = vpop.f32.mrf.mxu1 }
  0xc3   : > { %v400_v44 = vadd.f32 %v835_v39, %v399_v33  ;;  %v412_v52 = vadd.f32 %v835_v39, %v411_v34 }
  0xc5   : > { %v447_v48 = vmax.f32 %v400_v44, 0.0  ;;  %v451_v59 = vmax.f32 %v412_v52, 0.0 }
  0xca   : > { %v402_v35 = vpop.f32.mrf.mxu0  ;;  %v414_v36 = vpop.f32.mrf.mxu1 }
  0xcb   : > { %v423_v37 = vpop.f32.mrf.mxu2  ;;  %v435_v38 = vpop.f32.mrf.mxu3  ;;  %v403_v42 = vadd.f32 %v835_v39, %v402_v35  ;;  %v415_v57 = vadd.f32 %v835_v39, %v414_v36 }
  0xcc   : > { %v424_v2 = vadd.f32 %v835_v39, %v423_v37  ;;  %v436_v15 = vadd.f32 %v835_v39, %v435_v38  ;;  %v463_v38 = vld [vmem:[#allocation2] sm:$0x1] }
  0xcd   : > { %v448_v46 = vmax.f32 %v403_v42, 0.0  ;;  %v452_v63 = vmax.f32 %v415_v57, 0.0 }
  0xce   : > { %v455_v9 = vmax.f32 %v424_v2, 0.0  ;;  %v459_v22 = vmax.f32 %v436_v15, 0.0 }
  0xcf   : > { %v464_v51 = vadd.f32 %v448_v46, %v447_v48 }
  0xd2   : > { %v405_v40 = vpop.f32.mrf.mxu0  ;;  %v417_v41 = vpop.f32.mrf.mxu1 }
  0xd3   : > { %v426_v43 = vpop.f32.mrf.mxu2  ;;  %v406_v45 = vadd.f32 %v835_v39, %v405_v40  ;;  %v438_v47 = vpop.f32.mrf.mxu3  ;;  %v418_v61 = vadd.f32 %v835_v39, %v417_v41 }
  0xd4   : > { %v427_v8 = vadd.f32 %v835_v39, %v426_v43  ;;  %v439_v21 = vadd.f32 %v835_v39, %v438_v47 }
  0xd5   : > { %v449_v49 = vmax.f32 %v406_v45, 0.0  ;;  %v453_v3 = vmax.f32 %v418_v61, 0.0 }
  0xd6   : > { %v456_v13 = vmax.f32 %v427_v8, 0.0  ;;  %v460_v26 = vmax.f32 %v439_v21, 0.0 }
  0xd7   : > { %v465_v56 = vadd.f32 %v464_v51, %v449_v49 }
  0xda   : > { %v408_v50 = vpop.f32.mrf.mxu0  ;;  %v420_v55 = vpop.f32.mrf.mxu1 }
  0xdb   : > { %v409_v53 = vadd.f32 %v835_v39, %v408_v50  ;;  %v429_v54 = vpop.f32.mrf.mxu2  ;;  %v421_v62 = vadd.f32 %v835_v39, %v420_v55  ;;  %v441_v1 = vpop.f32.mrf.mxu3 }
  0xdc   : > { %v430_v11 = vadd.f32 %v835_v39, %v429_v54  ;;  %v442_v24 = vadd.f32 %v835_v39, %v441_v1 }
  0xdd   : > { %v450_v58 = vmax.f32 %v409_v53, 0.0  ;;  %v454_v5 = vmax.f32 %v421_v62, 0.0 }
  0xde   : > { %v457_v16 = vmax.f32 %v430_v11, 0.0  ;;  %v461_v28 = vmax.f32 %v442_v24, 0.0 }
  0xdf   : > { %v466_v60 = vadd.f32 %v465_v56, %v450_v58 }
  0xe1   : > { %v467_v0 = vadd.f32 %v466_v60, %v451_v59 }
  0xe3   : > { %v468_v4 = vadd.f32 %v467_v0, %v452_v63  ;;  %v432_v6 = vpop.f32.mrf.mxu2  ;;  %v444_v19 = vpop.f32.mrf.mxu3 }
  0xe4   : > { %v433_v12 = vadd.f32 %v835_v39, %v432_v6  ;;  %v445_v25 = vadd.f32 %v835_v39, %v444_v19 }
  0xe5   : > { %v469_v7 = vadd.f32 %v468_v4, %v453_v3 }
  0xe6   : > { %v458_v18 = vmax.f32 %v433_v12, 0.0  ;;  %v462_v30 = vmax.f32 %v445_v25, 0.0 }
  0xe7   : > { %v470_v10 = vadd.f32 %v469_v7, %v454_v5 }
  0xe9   : > { %v471_v14 = vadd.f32 %v470_v10, %v455_v9 }
  0xeb   : > { %v472_v17 = vadd.f32 %v471_v14, %v456_v13 }
  0xed   : > { %v473_v20 = vadd.f32 %v472_v17, %v457_v16 }
  0xef   : > { %v474_v23 = vadd.f32 %v473_v20, %v458_v18 }
  0xf1   : > { %v475_v27 = vadd.f32 %v474_v23, %v459_v22 }
  0xf3   : > { %v476_v29 = vadd.f32 %v475_v27, %v460_v26 }
  0xf5   : > { %v477_v31 = vadd.f32 %v476_v29, %v461_v28 }
  0xf7   : > { %v478_v32 = vadd.f32 %v477_v31, %v462_v30 }
  0xf9   : > { %v479_v33 = vrot.slane %v478_v32, 4 }
  0xfb   : > { %v480_v34 = vadd.f32 %v479_v33, %v478_v32 }
  0xfd   : > { %v481_v35 = vrot.slane %v480_v34, 2 }
  0xff   : > { %v482_v36 = vadd.f32 %v481_v35, %v480_v34 }
 0x101   : > { %v483_v37 = vrot.slane %v482_v36, 1 }
 0x103   : > { %v484_v40 = vadd.f32 %v483_v37, %v482_v36  ;;  %490 = sbr.rel (%p707_p1) target bundleno = 553 (0x229), region = 56 }
 0x105   : > { %v485_v41 = vadd.f32 %v484_v40, %v463_v38 }
 0x107   : > { %486 = vst [vmem:[#allocation2] sm:$0x1] %v485_v41 }
 0x108   : > { %v507_v39 = vld [vmem:[%s1332_s3 + $0x78] sm:$0xff]  ;;  %v506_v42 = vld [vmem:[%s1332_s3 + $0x70] sm:$0xff]  ;;  %v505_v43 = vld [vmem:[%s1332_s3 + $0x68] sm:$0xff] }
 0x109   : > { %509 = vmatpush.msra.mxu0 %v507_v39  ;;  %v504_v44 = vld [vmem:[%s1332_s3 + $0x60] sm:$0xff]  ;;  %v545_v45 = vld [vmem:[%s1334_s5 + $0x78] sm:$0xff]  ;;  %v544_v47 = vld [vmem:[%s1334_s5 + $0x70] sm:$0xff] }
 0x10a   : > { %v503_v46 = vld [vmem:[%s1332_s3 + $0x58] sm:$0xff]  ;;  %547 = vmatpush.msra.mxu1 %v545_v45  ;;  %v543_v48 = vld [vmem:[%s1334_s5 + $0x68] sm:$0xff]  ;;  %v502_v49 = vld [vmem:[%s1332_s3 + $0x50] sm:$0xff] }
 0x10b   : > { %510 = vmatpush.msra.mxu0 %v506_v42  ;;  %v542_v50 = vld [vmem:[%s1334_s5 + $0x60] sm:$0xff]  ;;  %v501_v51 = vld [vmem:[%s1332_s3 + $0x48] sm:$0xff]  ;;  %v541_v52 = vld [vmem:[%s1334_s5 + $0x58] sm:$0xff] }
 0x10c   : > { %548 = vmatpush.msra.mxu1 %v544_v47  ;;  %v500_v53 = vld [vmem:[%s1332_s3 + $0x40] sm:$0xff]  ;;  %v540_v54 = vld [vmem:[%s1334_s5 + $0x50] sm:$0xff]  ;;  %v499_v55 = vld [vmem:[%s1332_s3 + $0x38] sm:$0xff] }
 0x10d   : > { %511 = vmatpush.msra.mxu0 %v505_v43  ;;  %v539_v56 = vld [vmem:[%s1334_s5 + $0x48] sm:$0xff]  ;;  %v498_v57 = vld [vmem:[%s1332_s3 + $0x30] sm:$0xff]  ;;  %v538_v58 = vld [vmem:[%s1334_s5 + $0x40] sm:$0xff] }
 0x10e   : > { %549 = vmatpush.msra.mxu1 %v543_v48  ;;  %v497_v59 = vld [vmem:[%s1332_s3 + $0x28] sm:$0xff]  ;;  %v537_v60 = vld [vmem:[%s1334_s5 + $0x38] sm:$0xff]  ;;  %v496_v61 = vld [vmem:[%s1332_s3 + $0x20] sm:$0xff] }
 0x10f   : > { %512 = vmatpush.msra.mxu0 %v504_v44  ;;  %v536_v62 = vld [vmem:[%s1334_s5 + $0x30] sm:$0xff]  ;;  %v495_v63 = vld [vmem:[%s1332_s3 + $0x18] sm:$0xff]  ;;  %v535_v0 = vld [vmem:[%s1334_s5 + $0x28] sm:$0xff] }
 0x110   : > { %550 = vmatpush.msra.mxu1 %v542_v50  ;;  %v494_v1 = vld [vmem:[%s1332_s3 + $0x10] sm:$0xff]  ;;  %v534_v2 = vld [vmem:[%s1334_s5 + $0x20] sm:$0xff]  ;;  %v493_v3 = vld [vmem:[%s1332_s3 + $0x8] sm:$0xff] }
 0x111   : > { %513 = vmatpush.msra.mxu0 %v503_v46  ;;  %v533_v4 = vld [vmem:[%s1334_s5 + $0x18] sm:$0xff]  ;;  %v492_v5 = vld [vmem:[%s1332_s3] sm:$0xff]  ;;  %v532_v7 = vld [vmem:[%s1334_s5 + $0x10] sm:$0xff] }
 0x112   : > { %551 = vmatpush.msra.mxu1 %v541_v52  ;;  %v491_v6 = vld [vmem:[#allocation2] sm:$0x1]  ;;  %v531_v8 = vld [vmem:[%s1334_s5 + $0x8] sm:$0xff] }
 0x113   : > { %514 = vmatpush.msra.mxu0 %v502_v49  ;;  %v530_v9 = vld [vmem:[%s1334_s5] sm:$0xff] }
 0x114   : > { %552 = vmatpush.msra.mxu1 %v540_v54  ;;  %v508_v10 = vld [vmem:[%s1333_s4] sm:$0x1] }
 0x115   : > { %515 = vmatpush.msra.mxu0 %v501_v51  ;;  %v546_v13 = vld [vmem:[%s1335_s6] sm:$0x1] }
 0x116   : > { %553 = vmatpush.msra.mxu1 %v539_v56 }
 0x117   : > { %516 = vmatpush.msra.mxu0 %v500_v53 }
 0x118   : > { %554 = vmatpush.msra.mxu1 %v538_v58 }
 0x119   : > { %517 = vmatpush.msra.mxu0 %v499_v55 }
 0x11a   : > { %555 = vmatpush.msra.mxu1 %v537_v60 }
 0x11b   : > { %518 = vmatpush.msra.mxu0 %v498_v57 }
 0x11c   : > { %556 = vmatpush.msra.mxu1 %v536_v62 }
 0x11d   : > { %519 = vmatpush.msra.mxu0 %v497_v59 }
 0x11e   : > { %557 = vmatpush.msra.mxu1 %v535_v0 }
 0x11f   : > { %520 = vmatpush.msra.mxu0 %v496_v61 }
 0x120   : > { %558 = vmatpush.msra.mxu1 %v534_v2 }
 0x121   : > { %521 = vmatpush.msra.mxu0 %v495_v63 }
 0x122   : > { %559 = vmatpush.msra.mxu1 %v533_v4 }
 0x123   : > { %522 = vmatpush.msra.mxu0 %v494_v1 }
 0x124   : > { %560 = vmatpush.msra.mxu1 %v532_v7 }
 0x125   : > { %523 = vmatpush.msra.mxu0 %v493_v3 }
 0x126   : > { %561 = vmatpush.msra.mxu1 %v531_v8 }
 0x127   : > { %524 = vmatpush.msra.mxu0 %v492_v5 }
 0x128   : > { %525 = vmatmul.f32.vlgmr.msra.gmra.mxu0 %v491_v6  ;;  %562 = vmatpush.msra.mxu1 %v530_v9 }
 0x1a5   : > { %v526_v11 = vpop.f32.mrf.mxu0 }
 0x1a6   : > { %v527_v12 = vadd.f32 %v526_v11, %v508_v10 }
 0x1a8   : > { %529 = vst [vmem:[%s330_s15] sm:$0x1] %v527_v12  ;;  %563 = vmatmul.f32.vlgmr.msra.gmra.mxu1 %v527_v12 }
 0x225   : > { %v564_v14 = vpop.f32.mrf.mxu1 }
 0x226   : > { %v565_v15 = vadd.f32 %v564_v14, %v546_v13 }
 0x228   : > { %567 = vst [vmem:[%s324_s16] sm:$0x1] %v565_v15 }
 0x229 PF: > { %s581_s19 = scalar_lea.hbm %s1336_s7, %s950_s9  ;;  %s583_s24 = sshll.u32 %s324_s16, 4  ;;  %s584_s24 = int_to_ptr.vmem [resolvable:$true] %s583_s24 }
 0x22a   : > { %s585_s23 = sshll.u32 %s581_s19, 4  ;;  %s569_s25 = scalar_lea.sflag [#allocation4], %s1080_s22  ;;  %s586_s23 = int_to_ptr.hbm [resolvable:$true] %s585_s23 }
 0x22b   : > { %s850_s30 = sshra.s32 %s586_s23, 4  ;;  %s856_s14 = scalar_lea.hbm %s1336_s7, 2  ;;  %s851_s30 = int_to_ptr.hbm [resolvable:$true] %s850_s30 }
 0x22c   : > { %s852_s26 = scalar_lea.hbm %s851_s30, 1  ;;  %p857_p6 = scmp.lt.s32.totalorder %s851_s30, %s1336_s7 }
 0x22d   : > { %p853_p2 = scmp.ne.s32.totalorder %s851_s30, %s852_s26  ;;  %p858_p7 = scmp.lt.s32.totalorder %s856_s14, %s852_s26 }
 0x22f   : > { %p854_p4 = pnand %p853_p2, %p1059_p3  ;;  %p859_p8 = por %p858_p7, %p857_p6 }
 0x231   : > { %p855_p5 = pneg %p854_p4 }
 0x233   : > { %p860_p10 = pnand %p859_p8, %p855_p5 }
 0x235   : > { %863 = shalt.err (!%p860_p10)
}
 0x236   : > { %758 = dma.vmem_to_hbm [thread:$0]  (%p1059_p3), %s584_s24, 16, %s586_s23, %s569_s25  }
 0x237   : > { %s594_s13 = scalar_lea.hbm %s1337_s8, %s950_s9  ;;  %s596_s20 = sshll.u32 %s330_s15, 4  ;;  %s597_s20 = int_to_ptr.vmem [resolvable:$true] %s596_s20 }
 0x238   : > { %s598_s0 = sshll.u32 %s594_s13, 4  ;;  %s573_s30 = scalar_lea.sflag [#allocation6], %s1080_s22  ;;  %s599_s0 = int_to_ptr.hbm [resolvable:$true] %s598_s0 }
 0x239   : > { %s878_s26 = sshra.s32 %s599_s0, 4  ;;  %s884_s24 = scalar_lea.hbm %s1337_s8, 2  ;;  %s879_s26 = int_to_ptr.hbm [resolvable:$true] %s878_s26 }
 0x23a   : > { %s880_s14 = scalar_lea.hbm %s879_s26, 1  ;;  %p885_p0 = scmp.lt.s32.totalorder %s879_s26, %s1337_s8 }
 0x23b   : > { %p881_p11 = scmp.ne.s32.totalorder %s879_s26, %s880_s14  ;;  %p886_p1 = scmp.lt.s32.totalorder %s884_s24, %s880_s14 }
 0x23d   : > { %p882_p12 = pnand %p881_p11, %p1059_p3  ;;  %p887_p2 = por %p886_p1, %p885_p0 }
 0x23f   : > { %p883_p13 = pneg %p882_p12 }
 0x241   : > { %p888_p4 = pnand %p887_p2, %p883_p13 }
 0x243   : > { %891 = shalt.err (!%p888_p4)
}
 0x244   : > { %759 = dma.vmem_to_hbm [thread:$0]  (%p1059_p3), %s597_s20, 16, %s599_s0, %s573_s30  }
 0x245 PF: > { %p769_p5 = scmp.ge.s32.totalorder %s962_s12, 2  ;;  %s610_s9 = sand.u32 1, %s934_s27  }
 0x246   : > { %s611_s15 = scalar_lea.sflag [#allocation4], %s610_s9 }
 0x247   : > { %p763_p6 = pnand %p769_p5, %p1069_p9 }
 0x249   : > { %p764_p7 = pneg %p763_p6 }
 0x24b   : > { %925 = dma.done.wait (%p764_p7), %s611_s15, 16  }
 0x24c   : > { %927 = vsyncadd (%p764_p7), %s611_s15, 4294967280  ;;  %s620_s22 = scalar_lea.sflag [#allocation6], %s610_s9 }
 0x24d   : > { %929 = dma.done.wait (%p764_p7), %s620_s22, 16  }
 0x24e   : > { %931 = vsyncadd (%p764_p7), %s620_s22, 4294967280  ;;  %s25_s12 = sadd.s32 1, %s962_s12   ;;  %s1349_s30 = sld [smem:[#allocation9_spill]] }
 0x24f   : > { %p22_p8 = scmp.ge.s32.totalorder %s25_s12, 6   ;;  %s1350_s9 = sld [smem:[#allocation10_spill]] }
 0x250   : > { %s1351_s10 = sld [smem:[#allocation11_spill]]  ;;  %s1353_s27 = smov %s938_s28 }
 0x251   : > { %s1352_s11 = sld [smem:[#allocation12_spill]]  ;;  %s1354_s28 = smov %s942_s29 }
 0x252   : > { %s1355_s29 = smov %s1077_s21  ;;  %24 = sbr.rel (!%p22_p8) target bundleno = 9 (0x9), region = 108 }
 0x257   :  { %625 = vsyncpa [#allocation4], 1 }
 0x258   :  { %627 = vsyncpa [#allocation4 + $0x1], 1 }
 0x259   :  { %628 = vsyncpa [#allocation6], 1 }
 0x25a   :  { %630 = vsyncpa [#allocation6 + $0x1], 1 }

</bundles_post_ra>
